<compile_context>
chip_gen: v5e
topology: v5e:2x2
jax: 0.10.0
libtpu: 0.0.40
codegen_flags: <defaults>
</compile_context>

<pallas_src>
import math

import jax
import jax.numpy as jnp
from jax.experimental import pallas as pl
from jax.experimental.pallas import tpu as pltpu

_LOG_2PI = math.log(2.0 * math.pi)


def _make_kernel(rows, coef_resident):
    """Kernel factory: one grid step == ROWS (batch, time) rows over the grid."""

    def kernel(coef_ref, pxy_ref, out_ref):
        # coef_ref : VMEM f32[BT_pad, 8] (resident) or f32[ROWS, 8] (per-step)
        #            columns = [mx, my, cxx, cxy, cyy, c0, 0, 0]
        # pxy_ref  : VMEM f32[2, N_pad]   row 0 = x coords, row 1 = y coords
        # out_ref  : VMEM    [ROWS, N_pad] normalized density
        if coef_resident:
            base = pl.multiple_of(pl.program_id(0) * rows, 8)
            c = coef_ref[pl.ds(base, rows), :]            # (ROWS, 8)
        else:
            c = coef_ref[...]                             # (ROWS, 8)
        mx, my = c[:, 0:1], c[:, 1:2]
        cxx, cxy = c[:, 2:3], c[:, 3:4]
        cyy, c0 = c[:, 4:5], c[:, 5:6]

        px = pxy_ref[0:1, :]                              # (1, N_pad)
        py = pxy_ref[1:2, :]

        dx = px - mx                                      # (ROWS, N_pad) broadcast
        dy = py - my

        # log N(x; mu, Sigma), Horner-factored: 5 mul + 3 add per element (VPU).
        logp = dx * (cxx * dx + cxy * dy) + (cyy * dy) * dy + c0

        # Per-row min/max on logp (XLU lane reductions; exp is monotone).
        lmax = jnp.max(logp, axis=-1, keepdims=True)      # (ROWS, 1)
        lmin = jnp.min(logp, axis=-1, keepdims=True)

        # (p - pmin)/(pmax - pmin) == (exp(logp - lmax) - r)/(1 - r), r=exp(lmin-lmax).
        # exp(logp - lmax) <= 1 -> no f32 overflow for tiny det; maximum() guards
        # the degenerate lmax == lmin row (output 0 instead of NaN).
        r = jnp.exp(lmin - lmax)                          # (ROWS, 1)
        inv = 1.0 / jnp.maximum(1.0 - r, 1e-30)           # exact divide, per row
        out_ref[...] = ((jnp.exp(logp - lmax) - r) * inv).astype(out_ref.dtype)

    return kernel


def _default_covar(mu, data_diffusion, data_radius):
    """Mirrors the module's `covar is None` branch."""
    BS, T, _ = mu.shape
    eye = jnp.eye(2, dtype=jnp.float32)
    covar = data_diffusion * jnp.broadcast_to(eye, (BS, T, 2, 2))
    d00 = covar[..., 0, 0] + mu[..., 0] / data_radius * data_diffusion * 0.33
    d11 = covar[..., 1, 1] + mu[..., 1] / data_radius * data_diffusion * 0.33
    return covar.at[..., 0, 0].set(d00).at[..., 1, 1].set(d11)


def _pick_rows(BT, N_pad, target_bytes=2 << 20, max_rows=2048):
    """ROWS per step: multiple of 8, ~target_bytes output block, grid >= 2 & even."""
    bytes_per_row = 4 * N_pad
    bt8 = ((BT + 7) // 8) * 8
    rows0 = max(8, min(max_rows, (target_bytes // bytes_per_row) // 8 * 8, bt8))
    best = rows0
    steps0 = -(-BT // rows0)
    # Prefer an even grid of >= 2 steps (v7x shards the "parallel" axis over
    # two TensorCores) as long as it does not inflate the step count by >4x.
    r = rows0
    while r >= 8:
        g = -(-BT // r)
        if g >= 2 and g % 2 == 0:
            if g <= max(2, 4 * steps0):
                best = r
            break
        r -= 8
    return best


def analytical_decoder(mu, covar=None, *, data_res, data_diffusion=1.0,
                       data_radius=1.0, out_dtype=jnp.float32):
    """JAX/Pallas equivalent of AnalyticalDecoder.forward.

    mu    : f32[BS, T, 2]            ('latent_sim')
    covar : f32[BS, T, 2, 2] or None ('latent_augment')
    returns out_dtype[BS, T, 1, data_res, data_res]   (f32 by default;
            out_dtype=jnp.bfloat16 halves write bytes on write-bound v5e)
    """
    mu = jnp.asarray(mu, jnp.float32)
    assert mu.ndim == 3 and mu.shape[-1] == 2
    BS, T, _ = mu.shape
    BT = BS * T
    N = data_res * data_res
    N_pad = ((N + 127) // 128) * 128          # lane-dense output slab

    if covar is None:
        covar = _default_covar(mu, data_diffusion, data_radius)
    covar = jnp.asarray(covar, jnp.float32)
    assert covar.shape == (BS, T, 2, 2)

    # Evaluation grid: np.meshgrid(x_, y_) 'xy' indexing, stacked as
    # (X.flatten(), Y.flatten()).T  ->  point k = (xs[j], ys[i]), k = i*res + j,
    # so reshape(..., res, res) matches the PyTorch [y, x] spatial layout.
    xs = jnp.linspace(-15.0, 15.0, data_res, dtype=jnp.float32)
    ys = jnp.linspace(-15.0, 15.0, data_res, dtype=jnp.float32)
    X, Y = jnp.meshgrid(xs, ys)
    px = X.reshape(-1).astype(jnp.float32)
    py = Y.reshape(-1).astype(jnp.float32)
    if N_pad != N:
        # Pad lanes by REPLICATING the last grid point: padded lanes duplicate an
        # existing density value, so per-row min/max are unchanged (no masking).
        px = jnp.concatenate([px, jnp.full((N_pad - N,), px[-1], jnp.float32)])
        py = jnp.concatenate([py, jnp.full((N_pad - N,), py[-1], jnp.float32)])
    pxy = jnp.stack([px, py], axis=0)                      # (2, N_pad)

    # Per-(b,t) Gaussian coefficients precomputed outside the kernel:
    #   logp = cxx*dx^2 + cxy*dx*dy + cyy*dy^2 + c0
    s00 = covar[..., 0, 0].reshape(BT)
    s01 = covar[..., 0, 1].reshape(BT)
    s10 = covar[..., 1, 0].reshape(BT)
    s11 = covar[..., 1, 1].reshape(BT)
    det = s00 * s11 - s01 * s10
    inv_det = 1.0 / det
    cxx = -0.5 * s11 * inv_det
    cxy = 0.5 * (s01 + s10) * inv_det
    cyy = -0.5 * s00 * inv_det
    c0 = -0.5 * jnp.log(det) - _LOG_2PI
    mx = mu[..., 0].reshape(BT)
    my = mu[..., 1].reshape(BT)

    rows = _pick_rows(BT, N_pad)
    grid = max(1, -(-BT // rows))
    BT_pad = grid * rows                                   # coefficient-table rows
    pad = BT_pad - BT

    zeros = jnp.zeros_like(mx)
    coef = jnp.stack([mx, my, cxx, cxy, cyy, c0, zeros, zeros], axis=-1)  # (BT, 8)
    if pad:
        # Padded rows feed only output rows that Pallas masks out; zeros are
        # benign (degenerate row handled by the in-kernel maximum() guard).
        coef = jnp.pad(coef, ((0, pad), (0, 0)))

    # Coefficient table: fully resident for small problems (one DMA total),
    # else one tiny (rows, 8) block per step.
    coef_resident = BT_pad <= 4096
    if coef_resident:
        coef_spec = pl.BlockSpec((BT_pad, 8), lambda i: (0, 0))
    else:
        coef_spec = pl.BlockSpec((rows, 8), lambda i: (i, 0))

    # VMEM budget: output double-buffer + ~4 blocks of compute temporaries
    # (dx/dy/logp/exp) + lane-padded coefficient table + resident pxy.
    block_bytes = rows * N_pad * 4
    coef_vmem = (BT_pad if coef_resident else rows) * 512 * 2
    est = 6 * block_bytes + 2 * 8 * N_pad * 4 + coef_vmem + (1 << 20)
    vmem_limit = None
    if est > (12 << 20):
        try:
            cap = int(pltpu.get_tpu_info().vmem_capacity_bytes) * 5 // 8
        except Exception:
            cap = 48 << 20
        vmem_limit = int(min(max(est, 32 << 20), max(cap, 32 << 20)))
    # TODO(synk): for very large data_res (rows=8 block >> scoped VMEM, i.e.
    # data_res >~ 512 on v7x's 64 MiB) the spatial axis should become a second
    # "arbitrary" grid axis with a two-pass running-min/max normalization.

    out = pl.pallas_call(
        _make_kernel(rows, coef_resident),
        out_shape=jax.ShapeDtypeStruct((BT, N_pad), out_dtype),
        grid_spec=pltpu.PrefetchScalarGridSpec(
            num_scalar_prefetch=0,
            grid=(grid,),
            in_specs=[coef_spec,
                      pl.BlockSpec((2, N_pad), lambda i: (0, 0))],  # resident
            out_specs=pl.BlockSpec((rows, N_pad), lambda i: (i, 0)),
        ),
        compiler_params=pltpu.CompilerParams(
            dimension_semantics=("parallel",),
            vmem_limit_bytes=vmem_limit),
    )(coef, pxy)

    if N_pad != N:
        out = out[:, :N]
    return out.reshape(BS, T, 1, data_res, data_res)


if __name__ == "__main__":
    key = jax.random.PRNGKey(0)

    # Small, module-consistent shapes: BS=2, T=8, feature dim F=2, data_res=16.
    BS, T = 2, 8
    data_res = 16
    data_diffusion = 2.0
    data_radius = 10.0

    mu = jax.random.uniform(key, (BS, T, 2), dtype=jnp.float32,
                            minval=-5.0, maxval=5.0)   # 'latent_sim'
    covar = None                                       # 'latent_augment'

    probs = analytical_decoder(mu, covar, data_res=data_res,
                               data_diffusion=data_diffusion,
                               data_radius=data_radius)
    probs = jax.block_until_ready(probs)

    assert probs.shape == (BS, T, 1, data_res, data_res)
    assert bool(jnp.all(jnp.isfinite(probs)))
    # Module asserts probs.min()==0 and probs.max()==1 (per the normalization).
    assert abs(float(jnp.min(probs)) - 0.0) < 1e-6
    assert abs(float(jnp.max(probs)) - 1.0) < 1e-6

    # Independent pure-JAX reference (scipy-style MVN logpdf) for correctness.
    covar_full = _default_covar(mu, data_diffusion, data_radius)
    xs = jnp.linspace(-15.0, 15.0, data_res, dtype=jnp.float32)
    ys = jnp.linspace(-15.0, 15.0, data_res, dtype=jnp.float32)
    X, Y = jnp.meshgrid(xs, ys)
    pts = jnp.stack([X.reshape(-1), Y.reshape(-1)], axis=-1)       # (N, 2)
    mu_f = mu.reshape(BS * T, 2)
    cv_f = covar_full.reshape(BS * T, 2, 2)
    logp_ref = jax.vmap(
        lambda m, c: jax.scipy.stats.multivariate_normal.logpdf(pts, m, c)
    )(mu_f, cv_f)                                                   # (BT, N)
    p_ref = jnp.exp(logp_ref)
    p_ref = (p_ref - p_ref.min(-1, keepdims=True)) / (
        p_ref.max(-1, keepdims=True) - p_ref.min(-1, keepdims=True))
    p_ref = p_ref.reshape(BS, T, 1, data_res, data_res)
    assert bool(jnp.allclose(probs, p_ref, atol=1e-4)), "mismatch vs JAX reference"

    print("KERNEL_OK")
</pallas_src>

<mosaic_0001>
module attributes {stable_mosaic.version = 11 : i64} {
  func.func @kernel(%arg0: i32, %arg1: memref<16x8xf32, #tpu.memory_space<vmem>>, %arg2: memref<2x256xf32, #tpu.memory_space<vmem>>, %arg3: memref<8x256xf32, #tpu.memory_space<vmem>>) attributes {dimension_semantics = [#tpu.dimension_semantics<parallel>], iteration_bounds = array<i64: 2>, scalar_prefetch = 0 : i64, scratch_operands = 0 : i64, tpu.core_type = #tpu.core_type<tc>, window_params = [{pipeline_mode = #tpu.pipeline_mode<synchronous>, transform_indices = @transform_0, window_bounds = array<i64: 16, 8>}, {pipeline_mode = #tpu.pipeline_mode<synchronous>, transform_indices = @transform_1, window_bounds = array<i64: 2, 256>}, {transform_indices = @transform_2, window_bounds = array<i64: 8, 256>}]} {
    %c8_i32 = arith.constant 8 : i32
    %0 = arith.muli %arg0, %c8_i32 : i32
    %1 = tpu.assume_multiple %0, 8 : i32
    %2 = arith.index_cast %1 : i32 to index
    %c0 = arith.constant 0 : index
    %3 = vector.load %arg1[%2, %c0] : memref<16x8xf32, #tpu.memory_space<vmem>>, vector<8x8xf32>
    %4 = vector.extract_strided_slice %3 {offsets = [0, 0], sizes = [8, 1], strides = [1, 1]} : vector<8x8xf32> to vector<8x1xf32>
    %5 = vector.extract_strided_slice %3 {offsets = [0, 1], sizes = [8, 1], strides = [1, 1]} : vector<8x8xf32> to vector<8x1xf32>
    %6 = vector.extract_strided_slice %3 {offsets = [0, 2], sizes = [8, 1], strides = [1, 1]} : vector<8x8xf32> to vector<8x1xf32>
    %7 = vector.extract_strided_slice %3 {offsets = [0, 3], sizes = [8, 1], strides = [1, 1]} : vector<8x8xf32> to vector<8x1xf32>
    %8 = vector.extract_strided_slice %3 {offsets = [0, 4], sizes = [8, 1], strides = [1, 1]} : vector<8x8xf32> to vector<8x1xf32>
    %9 = vector.extract_strided_slice %3 {offsets = [0, 5], sizes = [8, 1], strides = [1, 1]} : vector<8x8xf32> to vector<8x1xf32>
    %c0_0 = arith.constant 0 : index
    %c0_1 = arith.constant 0 : index
    %10 = vector.load %arg2[%c0_0, %c0_1] : memref<2x256xf32, #tpu.memory_space<vmem>>, vector<1x256xf32>
    %c1 = arith.constant 1 : index
    %c0_2 = arith.constant 0 : index
    %11 = vector.load %arg2[%c1, %c0_2] : memref<2x256xf32, #tpu.memory_space<vmem>>, vector<1x256xf32>
    %12 = vector.broadcast %10 : vector<1x256xf32> to vector<8x256xf32>
    %13 = vector.broadcast %4 : vector<8x1xf32> to vector<8x256xf32>
    %14 = arith.subf %12, %13 : vector<8x256xf32>
    %15 = vector.broadcast %11 : vector<1x256xf32> to vector<8x256xf32>
    %16 = vector.broadcast %5 : vector<8x1xf32> to vector<8x256xf32>
    %17 = arith.subf %15, %16 : vector<8x256xf32>
    %18 = vector.broadcast %6 : vector<8x1xf32> to vector<8x256xf32>
    %19 = arith.mulf %18, %14 : vector<8x256xf32>
    %20 = vector.broadcast %7 : vector<8x1xf32> to vector<8x256xf32>
    %21 = arith.mulf %20, %17 : vector<8x256xf32>
    %22 = arith.addf %19, %21 : vector<8x256xf32>
    %23 = arith.mulf %14, %22 : vector<8x256xf32>
    %24 = vector.broadcast %8 : vector<8x1xf32> to vector<8x256xf32>
    %25 = arith.mulf %24, %17 : vector<8x256xf32>
    %26 = arith.mulf %25, %17 : vector<8x256xf32>
    %27 = arith.addf %23, %26 : vector<8x256xf32>
    %28 = vector.broadcast %9 : vector<8x1xf32> to vector<8x256xf32>
    %29 = arith.addf %27, %28 : vector<8x256xf32>
    %cst = arith.constant dense<0xFF800000> : vector<8xf32>
    %30 = vector.multi_reduction <maximumf>, %29, %cst [1] : vector<8x256xf32> to vector<8xf32>
    %31 = vector.shape_cast %30 : vector<8xf32> to vector<8x1xf32>
    %cst_3 = arith.constant dense<0x7F800000> : vector<8xf32>
    %32 = vector.multi_reduction <minimumf>, %29, %cst_3 [1] : vector<8x256xf32> to vector<8xf32>
    %33 = vector.shape_cast %32 : vector<8xf32> to vector<8x1xf32>
    %34 = arith.subf %33, %31 : vector<8x1xf32>
    %35 = math.exp %34 : vector<8x1xf32>
    %cst_4 = arith.constant 1.000000e+00 : f32
    %36 = vector.broadcast %cst_4 : f32 to vector<8x1xf32>
    %37 = arith.subf %36, %35 : vector<8x1xf32>
    %cst_5 = arith.constant 1.000000e-30 : f32
    %38 = vector.broadcast %cst_5 : f32 to vector<8x1xf32>
    %39 = arith.maximumf %37, %38 : vector<8x1xf32>
    %cst_6 = arith.constant 1.000000e+00 : f32
    %40 = vector.broadcast %cst_6 : f32 to vector<8x1xf32>
    %41 = arith.divf %40, %39 : vector<8x1xf32>
    %42 = vector.broadcast %31 : vector<8x1xf32> to vector<8x256xf32>
    %43 = arith.subf %29, %42 : vector<8x256xf32>
    %44 = math.exp %43 : vector<8x256xf32>
    %45 = vector.broadcast %35 : vector<8x1xf32> to vector<8x256xf32>
    %46 = arith.subf %44, %45 : vector<8x256xf32>
    %47 = vector.broadcast %41 : vector<8x1xf32> to vector<8x256xf32>
    %48 = arith.mulf %46, %47 : vector<8x256xf32>
    %c0_7 = arith.constant 0 : index
    %c0_8 = arith.constant 0 : index
    %49 = vector.load %arg3[%c0_7, %c0_8] : memref<8x256xf32, #tpu.memory_space<vmem>>, vector<8x256xf32>
    tpu.vector_store %arg3[%c0_7, %c0_8], %48 {strides = array<i32>} : memref<8x256xf32, #tpu.memory_space<vmem>>, vector<8x256xf32>,
    return
  }
  func.func @transform_0(%arg0: i32) -> (i32, i32) {
    %c0_i32 = arith.constant 0 : i32
    %c0_i32_0 = arith.constant 0 : i32
    %c0_i32_1 = arith.constant 0 : i32
    return %c0_i32, %c0_i32_0 : i32, i32
  }
  func.func @transform_1(%arg0: i32) -> (i32, i32) {
    %c0_i32 = arith.constant 0 : i32
    %c0_i32_0 = arith.constant 0 : i32
    %c0_i32_1 = arith.constant 0 : i32
    return %c0_i32, %c0_i32_0 : i32, i32
  }
  func.func @transform_2(%arg0: i32) -> (i32, i32) {
    %c0_i32 = arith.constant 0 : i32
    %c0_i32_0 = arith.constant 0 : i32
    return %arg0, %c0_i32 : i32, i32
  }
}

</mosaic_0001>

<bundles_post_ra>
// kernel: tpu_custom_call.1
= control target key start
LH: loop header
LB: loop body
LE: loop exit
PB: predicated region body
PF: predicated region fallthrough
CT: control target
= control target key end

     0   :  { %7 = vsyncpa [#allocation3], 0  ;;  %s538_s0 = inlined_call_operand.vmem [shape: f32[16,8], index: 0, kind: input, shape index: {}]   ;;  %s539_s1 = inlined_call_operand.vmem [shape: f32[2,256], index: 1, kind: input, shape index: {}]   ;;  %s540_s2 = inlined_call_operand.hbm [shape: f32[16,256], index: 2, kind: output, shape index: {}]  }
   0x1   :  { %9 = vsyncpa [#allocation3 + $0x1], 0  ;;  %s444_s9 = smov 0   ;;  %s446_s10 = smov 0  }
   0x2   :  { %s448_s11 = smov 0   ;;  %s450_s12 = smov 0  }
   0x3 LB: > { %s465_s13 = sadd.s32 4294967295, %s421_s12   ;;  %s287_s14 = sadd.s32 4294967294, %s421_s12   ;;  %s421_s12 = sphi %s450_s12, %s546_s12   ;;  %s417_s11 = sphi %s448_s11, %s545_s11   ;;  %s413_s10 = sphi %s446_s10, %s544_s10   ;;  %s409_s9 = sphi %s444_s9, %s543_s9  }
   0x4   : > { %s469_s15 = sadd.s32 1, %s421_s12   ;;  %s64_s16 = sadd.s32 1, %s417_s11 }
   0x5   : > { %s61_s17 = ssub.s32 %s421_s12, %s469_s15  ;;  %p74_p0 = scmp.ne.s32.totalorder %s417_s11, %s413_s10 }
   0x6   : > { %p62_p1 = scmp.eq.s32.totalorder %s61_s17, 0  ;;  %p75_p2 = scmp.eq.s32.totalorder %s465_s13, 1 }
   0x7   : > { %p80_p3 = scmp.ne.s32.totalorder %s413_s10, %s409_s9  ;;  %p81_p4 = scmp.eq.s32.totalorder %s287_s14, 1 }
   0x8   : > { %s480_s18 = scalar_select %p62_p1, %s417_s11, %s64_s16  }
   0x9   : > { %p482_p5 = por %p75_p2, %p74_p0  ;;  %p486_p6 = por %p81_p4, %p80_p3 }
   0xa   : > { %p289_p7 = scmp.ge.s32.totalorder %s421_s12, 1  ;;  %p105_p8 = scmp.lt.s32.totalorder %s421_s12, 3 }
   0xc   : > { %p106_p9 = pnand %p289_p7, %p105_p8 }
   0xd   : > { %s291_s21 = sshll.u32 (!%p106_p9), %s465_s13, 3  ;;  %s119_s29 = sand.u32 (!%p106_p9), 1, %s413_s10  }
   0xe   : > { %109 = sbr.rel (%p106_p9) target bundleno = 313 (0x139), region = 28  ;;  %s123_s24 = scalar_lea.vmem (!%p106_p9), %s538_s0, %s291_s21 }
   0xf   : > { %s290_s30 = sshll.u32 (!%p106_p9), %s119_s29, 4  ;;  %s298_s3 = sshll.u32 (!%p106_p9), %s465_s13, 4 }
  0x10   : > { %s233_s6 = scalar_lea.hbm (!%p106_p9), %s540_s2, %s298_s3  ;;  %s121_s7 = scalar_lea.vmem (!%p106_p9), [#allocation2], %s290_s30 }
  0x11   : > { %s235_s8 = sshll.u32 (!%p106_p9), %s121_s7, 4  ;;  %s237_s13 = sshll.u32 (!%p106_p9), %s233_s6, 4  ;;  %s236_s8 = int_to_ptr.vmem [resolvable:$true] %s235_s8  ;;  %s238_s13 = int_to_ptr.hbm [resolvable:$true] %s237_s13 }
  0x12   : > { %s222_s14 = scalar_lea.sflag (!%p106_p9), [#allocation3], %s119_s29  ;;  %s373_s16 = sshra.s32 (!%p106_p9), %s238_s13, 4  ;;  %s374_s16 = int_to_ptr.hbm [resolvable:$true] %s373_s16 }
  0x13   : > { %v423_v0 = vmov 0   ;;  %v424_v1 = vmov 2   ;;  %v124_v2 = vld [vmem:[%s123_s24] sm:$0xff]  ;;  %v425_v3 = vmov 4   ;;  %v426_v4 = vmov 1   ;;  %s375_s17 = scalar_lea.hbm %s374_s16, 16  ;;  %p380_p13 = scmp.lt.s32.totalorder %s374_s16, %s540_s2 }
  0x14   : > { %344 = vset.pattern.permute.xlu0 %v423_v0  ;;  %346 = vset.pattern.permute.xlu1 %v424_v1  ;;  %v427_v5 = vmov 3   ;;  %v428_v6 = vmov 5   ;;  %v125_v7 = vld [vmem:[%s539_s1] ss:$2 sm:$0x3]  ;;  %p376_p10 = scmp.ne.s32.totalorder %s374_s16, %s375_s17  ;;  %s379_s23 = scalar_lea.hbm %s540_s2, 32 }
  0x15   : > { %348 = vset.pattern.permute.xlu2 %v425_v3  ;;  %135 = vperm.xlu0 %344, %v124_v2   ;;  %v129_v10 = vperm.slane %v125_v7, 0  ;;  %v130_v11 = vperm.slane %v125_v7, 1  ;;  %v292_v12 = vld [vmem:[%s539_s1 + $0x1] ss:$2 sm:$0x3]  ;;  %p381_p0 = scmp.lt.s32.totalorder %s379_s23, %s375_s17 }
  0x16   : > { %152 = vperm.xlu1 %346, %v124_v2   ;;  %168 = vperm.xlu2 %348, %v124_v2   ;;  %v141_v13 = vperm.slane %v292_v12, 0  ;;  %v142_v14 = vperm.slane %v292_v12, 1  ;;  %p377_p11 = pnand %p376_p10, %p482_p5 }
  0x17   : > { %p382_p1 = por %p381_p0, %p380_p13 }
  0x18   : > { %p378_p12 = pneg %p377_p11 }
  0x1a   : > { %p383_p2 = pnand %p382_p1, %p378_p12 }
  0x1d   : > { %345 = vset.pattern.permute.xlu0 %v426_v4 }
  0x1e   : > { %347 = vset.pattern.permute.xlu1 %v427_v5  ;;  %146 = vperm.xlu0 %345, %v124_v2  }
  0x1f   : > { %158 = vperm.xlu1 %347, %v124_v2   ;;  %349 = vset.pattern.permute.xlu2 %v428_v6 }
  0x20   : > { %178 = vperm.xlu2 %349, %v124_v2  }
  0x26   : > { %350 = vset.pattern.permute.xlu0 %v428_v6 }
  0x70   : > { %v169_v17 = vpop.permute.xlu2 %168 }
  0x7a   : > { %v179_v34 = vpop.permute.xlu2 %178 }
  0x87   : > { %v136_v8 = vpop.permute.xlu0 %135 }
  0x88   : > { %v153_v9 = vpop.permute.xlu1 %152  ;;  %v138_v15 = vsub.f32 %v129_v10, %v136_v8  ;;  %v139_v16 = vsub.f32 %v130_v11, %v136_v8 }
  0x8a   : > { %v155_v22 = vmul.f32 %v153_v9, %v138_v15  ;;  %v156_v23 = vmul.f32 %v153_v9, %v139_v16 }
  0x90   : > { %v147_v18 = vpop.permute.xlu0 %146 }
  0x91   : > { %v159_v19 = vpop.permute.xlu1 %158  ;;  %v149_v20 = vsub.f32 %v141_v13, %v147_v18  ;;  %v150_v21 = vsub.f32 %v142_v14, %v147_v18 }
  0x93   : > { %v171_v24 = vmul.f32 %v169_v17, %v149_v20  ;;  %v172_v25 = vmul.f32 %v169_v17, %v150_v21  ;;  %v161_v26 = vmul.f32 %v159_v19, %v149_v20  ;;  %v162_v27 = vmul.f32 %v159_v19, %v150_v21 }
  0x95   : > { %v163_v28 = vadd.f32 %v161_v26, %v155_v22  ;;  %v164_v29 = vadd.f32 %v162_v27, %v156_v23  ;;  %v173_v30 = vmul.f32 %v171_v24, %v149_v20  ;;  %v174_v31 = vmul.f32 %v172_v25, %v150_v21 }
  0x97   : > { %v165_v32 = vmul.f32 %v163_v28, %v138_v15  ;;  %v166_v33 = vmul.f32 %v164_v29, %v139_v16 }
  0x99   : > { %v175_v35 = vadd.f32 %v173_v30, %v165_v32  ;;  %v176_v36 = vadd.f32 %v174_v31, %v166_v33 }
  0x9b   : > { %v181_v37 = vadd.f32 %v179_v34, %v175_v35  ;;  %v182_v38 = vadd.f32 %v179_v34, %v176_v36 }
  0x9d   : > { %v186_v39 = vmin.f32 %v181_v37, %v182_v38  ;;  %v183_v40 = vmax.f32 %v181_v37, %v182_v38 }
  0x9f   : > { %187 = vmin.xlane.f32.xlu2 %v186_v39  ;;  %184 = vmax.xlane.f32.xlu1 %v183_v40 }
 0x112   : > { %v188_v41 = vpop.xlane.xlu2 %187  ;;  %v185_v42 = vpop.xlane.xlu1 %184 }
 0x113   : > { %v189_v43 = vsub.f32 %v188_v41, %v185_v42  ;;  %v209_v47 = vsub.f32 %v181_v37, %v185_v42  ;;  %v210_v49 = vsub.f32 %v182_v38, %v185_v42 }
 0x115   : > { %v190_v44 = vmul.f32 1.442695, %v189_v43  ;;  %v211_v50 = vmul.f32 1.442695, %v209_v47  ;;  %v213_v51 = vmul.f32 1.442695, %v210_v49 }
 0x117   : > { %351 = vpow2.f32 %v190_v44 }
 0x11d   : > { %v352_v45 = vpop.eup %351 }
 0x11e   : > { %v192_v46 = vsub.f32 1.0, %v352_v45 }
 0x120   : > { %v193_v48 = vmax.f32 %v192_v46, 1e-30 }
 0x122   : > { %353 = vrcp.f32 %v193_v48  ;;  %v205_v55 = vand.u32 2147483648, %v193_v48  ;;  %v203_v58 = vand.u32 2147483647, %v193_v48  ;;  %vm199_vm1 = vweird.f32 %v193_v48 }
 0x123   : > { %355 = vpow2.f32 %v211_v50 }
 0x124   : > { %357 = vpow2.f32 %v213_v51  ;;  %v206_v61 = vor.u32 1.1754944e-38, %v205_v55  ;;  %vm204_vm3 = vcmp.eq.f32.partialorder %v203_v58, 8.507059e+37 }
 0x128   : > { %v354_v52 = vpop.eup %353 }
 0x129   : > { %v195_v53 = vmul.f32 %v354_v52, %v193_v48  ;;  %v356_v56 = vpop.eup %355  ;;  %vm200_vm0 = vweird.f32 %v354_v52 }
 0x12a   : > { %v358_v59 = vpop.eup %357  ;;  %vm201_vm2 = vmor %vm199_vm1, %vm200_vm0  ;;  %v215_v63 = vsub.f32 %v356_v56, %v352_v45 }
 0x12b   : > { %v196_v54 = vsub.f32 1.0, %v195_v53  ;;  %v216_v0 = vsub.f32 %v358_v59, %v352_v45 }
 0x12d   : > { %v197_v57 = vmul.f32 %v354_v52, %v196_v54 }
 0x12f   : > { %v198_v60 = vadd.f32 %v354_v52, %v197_v57 }
 0x131   : > { %v202_v62 = vsel %vm201_vm2, %v354_v52, %v198_v60 }
 0x132   : > { %v207_v1 = vsel %vm204_vm3, %v206_v61, %v202_v62 }
 0x133   : > { %v217_v2 = vmul.f32 %v215_v63, %v207_v1  ;;  %v218_v3 = vmul.f32 %v216_v0, %v207_v1 }
 0x135   : > { %219 = vst [vmem:[%s121_s7] sm:$0xff] %v217_v2 }
 0x136   : > { %220 = vst [vmem:[%s121_s7 + $0x8] sm:$0xff] %v218_v3 }
 0x137   : > { %386 = shalt.err (!%p383_p2)
}
 0x138   : > { %299 = dma.vmem_to_hbm [thread:$0]  (%p482_p5), %s236_s8, 256, %s238_s13, %s222_s14  }
 0x139 PF: > { %p305_p3 = scmp.ge.s32.totalorder %s421_s12, 2  ;;  %s249_s26 = sand.u32 1, %s409_s9  }
 0x13a   : > { %s250_s27 = scalar_lea.sflag [#allocation3], %s249_s26 }
 0x13b   : > { %p302_p4 = pnand %p305_p3, %p486_p6 }
 0x13d   : > { %p303_p7 = pneg %p302_p4 }
 0x13f   : > { %404 = dma.done.wait (%p303_p7), %s250_s27, 256  }
 0x140   : > { %406 = vsyncadd (%p303_p7), %s250_s27, 4294967040  ;;  %p12_p8 = scmp.ge.s32.totalorder %s469_s15, 4   ;;  %s543_s9 = smov %s413_s10 }
 0x141   : > { %s544_s10 = smov %s417_s11  ;;  %s545_s11 = smov %s480_s18 }
 0x142   : > { %s546_s12 = smov %s469_s15  ;;  %14 = sbr.rel (!%p12_p8) target bundleno = 3 (0x3), region = 62 }
 0x147   :  { %256 = vsyncpa [#allocation3], 1 }
 0x148   :  { %258 = vsyncpa [#allocation3 + $0x1], 1 }

</bundles_post_ra>
